<compile_context>
chip_gen: v5e
topology: v5e:2x2
jax: 0.10.0
libtpu: 0.0.40
codegen_flags: <defaults>
</compile_context>

<pallas_src>
import jax
import jax.numpy as jnp
from jax import lax
from jax.experimental import pallas as pl
from jax.experimental.pallas import tpu as pltpu

IGNORE_LABEL = 255  # cfg.DATASET.IGNORE_LABEL


def _round_up(x, m):
    return ((x + m - 1) // m) * m


def _pick_tile(hw, c, itemsize, tp_cap, logits_budget):
    """Pixel-tile width tp (lanes, multiple of 128) and padded label length."""
    budget_tp = max(128, logits_budget // (2 * c * itemsize))  # double-buffered logits
    tp = int(min(tp_cap, budget_tp, _round_up(hw, 128)))
    if tp >= 512:
        tp = (tp // 512) * 512        # keep the 512-lane sub-tile loop clean
    else:
        tp = max(128, (tp // 128) * 128)
    hw_pad = _round_up(hw, tp)
    return tp, hw_pad


def _pick_sub(tp):
    for s in (512, 256, 128):
        if tp % s == 0:
            return s
    return tp


def _make_kernel(c, tp, sub):
    n_sub = tp // sub

    def kernel(logits_ref, targets_ref, weight_ref, loss_ref, wsum_ref):
        # logits_ref: (C, TP) native dtype (possibly a partial boundary block);
        # targets_ref: (1, TP) int8/int32, ignore & pad lanes hold -1;
        # weight_ref: (C, 1) f32; loss_ref / wsum_ref: (1, TP) f32 lane-wide
        # accumulators, resident across the pixel-tile grid axis (axis 2).
        @pl.when(pl.program_id(2) == 0)
        def _init():
            loss_ref[...] = jnp.zeros_like(loss_ref)
            wsum_ref[...] = jnp.zeros_like(wsum_ref)

        # Hoisted out of the sub-tile loop (JAX does not CSE broadcast/iota).
        w_bc = jnp.broadcast_to(weight_ref[...].astype(jnp.float32), (c, sub))
        cls = lax.broadcasted_iota(jnp.int32, (c, sub), 0)

        def body(j):
            if isinstance(j, int):
                off = j * sub
            else:
                off = pl.multiple_of(j * sub, sub)

            x = logits_ref[:, pl.ds(off, sub)].astype(jnp.float32)   # (C, SUB)
            t = targets_ref[:, pl.ds(off, sub)].astype(jnp.int32)    # (1, SUB)

            # log-sum-exp over the class (sublane) axis
            m = jnp.max(x, axis=0, keepdims=True)                    # (1, SUB)
            lse = jnp.log(jnp.sum(jnp.exp(x - m), axis=0, keepdims=True)) + m

            # one-hot gather of the target logit and its class weight
            onehot = cls == t                                        # (C, SUB)
            picked_x = jnp.sum(jnp.where(onehot, x, 0.0), axis=0, keepdims=True)
            picked_w = jnp.sum(jnp.where(onehot, w_bc, 0.0), axis=0, keepdims=True)

            # Ignore / pad lanes carry label -1, so the select masks them; any
            # garbage logits in a partial boundary block only ever appear in the
            # unselected branch of jnp.where (no NaN*0 folding).
            valid = t >= 0
            nll = lse - picked_x                                     # -log_softmax[t]
            loss_ref[:, pl.ds(off, sub)] += jnp.where(valid, nll * picked_w, 0.0)
            wsum_ref[:, pl.ds(off, sub)] += jnp.where(valid, picked_w, 0.0)

        # TODO(synk): on v7x the lse denominator and picked_w reductions could be
        # MXU-offloaded (ones(1,C)@exp(x-m), w(1,C)@onehot) to free VPU/XLU
        # slots; skipped here because C is tiny at the demo shapes.
        if n_sub == 1:
            body(0)
        else:
            @pl.loop(0, n_sub)
            def _loop(j):
                body(j)

    return kernel


def cross_entropy_loss_2d(inputs, targets, weight=None, *,
                          tp_cap=32768, logits_vmem_budget=24 << 20):
    """CrossEntropyLoss2d forward: NLLLoss(log_softmax(inputs, 1)), mean reduction.

    inputs:  (N, C, H, W) float logits (any float dtype; DMA'd natively)
    targets: (N, H, W) integer labels; IGNORE_LABEL pixels are skipped
    weight:  optional (C,) per-class weights
    """
    N, C, H, W = inputs.shape
    HW = H * W

    if weight is None:
        weight = jnp.ones((C,), jnp.float32)
    weight = weight.astype(jnp.float32).reshape(C, 1)

    # Free reshape (no transpose, no extra HBM pass): class axis on sublanes,
    # pixel axis on lanes.
    logits = inputs.reshape(N, C, HW)

    # Labels: remap IGNORE_LABEL -> -1 and shrink to int8 (1 B/pixel instead of
    # 4) when C fits.  Labels outside [0, C) other than IGNORE_LABEL contribute
    # nothing (weight 0) instead of raising like PyTorch.
    label_dtype = jnp.int8 if C <= 127 else jnp.int32
    t32 = targets.reshape(N, 1, HW).astype(jnp.int32)
    labels = jnp.where(t32 == IGNORE_LABEL, -1, t32).astype(label_dtype)

    itemsize = jnp.dtype(inputs.dtype).itemsize
    tp, hw_pad = _pick_tile(HW, C, itemsize, tp_cap, logits_vmem_budget)
    sub = _pick_sub(tp)

    if hw_pad != HW:
        # Pad only the (tiny) label plane; logits stay un-padded and the
        # boundary logits block is a partial block masked via the -1 labels.
        labels = jnp.pad(labels, ((0, 0), (0, 0), (0, hw_pad - HW)),
                         constant_values=-1)

    n_tiles = hw_pad // tp
    # v7x megacore: give the second TensorCore work when N == 1 by splitting the
    # pixel-tile range into two "parallel" chunks with their own accumulators.
    splits = 2 if (N == 1 and n_tiles >= 2 and n_tiles % 2 == 0) else 1
    tiles_per_split = n_tiles // splits
    grid = (N, splits, tiles_per_split)

    label_itemsize = jnp.dtype(label_dtype).itemsize
    vmem_bytes = (2 * C * tp * itemsize          # double-buffered logits blocks
                  + 2 * tp * label_itemsize      # double-buffered label blocks
                  + 2 * C * 128 * 4              # weight (lane-padded)
                  + 2 * 2 * tp * 4               # two (1, tp) f32 accumulators
                  + (4 << 20))                   # headroom
    vmem_limit = int(min(max(vmem_bytes, 16 << 20), 48 << 20))

    kernel = _make_kernel(C, tp, sub)

    loss_part, w_part = pl.pallas_call(
        kernel,
        out_shape=(
            jax.ShapeDtypeStruct((N, splits, 1, tp), jnp.float32),
            jax.ShapeDtypeStruct((N, splits, 1, tp), jnp.float32),
        ),
        grid_spec=pltpu.PrefetchScalarGridSpec(
            num_scalar_prefetch=0,
            grid=grid,
            in_specs=[
                pl.BlockSpec((None, C, tp),
                             lambda n, s, i: (n, 0, s * tiles_per_split + i)),
                pl.BlockSpec((None, 1, tp),
                             lambda n, s, i: (n, 0, s * tiles_per_split + i)),
                pl.BlockSpec((C, 1), lambda n, s, i: (0, 0)),
            ],
            out_specs=[
                pl.BlockSpec((None, None, 1, tp), lambda n, s, i: (n, s, 0, 0)),
                pl.BlockSpec((None, None, 1, tp), lambda n, s, i: (n, s, 0, 0)),
            ],
        ),
        compiler_params=pltpu.CompilerParams(
            dimension_semantics=("parallel", "parallel", "arbitrary"),
            vmem_limit_bytes=vmem_limit,
        ),
    )(logits, labels, weight)

    # reduction='mean' with class weights: sum(w_t * nll) / sum(w_t) over valid
    # pixels (matches torch.nn.NLLLoss; with weight=None the denominator is the
    # valid-pixel count).  If every pixel is ignored this is 0/0 -> NaN, same as
    # PyTorch.  Final tiny reduction done in plain JAX.
    return jnp.sum(loss_part) / jnp.sum(w_part)


def _reference(inputs, targets, weight):
    # pure-JAX reference for sanity checking
    x = inputs.astype(jnp.float32)
    logp = jax.nn.log_softmax(x, axis=1)
    t = targets.astype(jnp.int32)
    valid = t != IGNORE_LABEL
    t_safe = jnp.where(valid, t, 0)
    picked = jnp.take_along_axis(logp, t_safe[:, None, :, :], axis=1)[:, 0]
    w = weight[t_safe]
    num = jnp.sum(jnp.where(valid, -picked * w, 0.0))
    den = jnp.sum(jnp.where(valid, w, 0.0))
    return num / den


if __name__ == "__main__":
    keys = jax.random.split(jax.random.PRNGKey(0), 8)

    # Test 1: weighted, f32 logits
    N, C, H, W = 2, 4, 16, 16
    inputs = jax.random.normal(keys[0], (N, C, H, W), jnp.float32)
    targets = jax.random.randint(keys[1], (N, H, W), 0, C).astype(jnp.int32)
    targets = targets.at[0, 0, :4].set(IGNORE_LABEL)   # some ignore_index pixels
    weight = jnp.linspace(0.5, 1.5, C, dtype=jnp.float32)

    loss = cross_entropy_loss_2d(inputs, targets, weight)
    jax.block_until_ready(loss)
    ref = _reference(inputs, targets, weight)
    assert jnp.allclose(loss, ref, rtol=1e-5, atol=1e-5), (loss, ref)

    # Test 2: native-dtype (bf16) DMA path
    loss_bf16 = cross_entropy_loss_2d(inputs.astype(jnp.bfloat16), targets, weight)
    jax.block_until_ready(loss_bf16)
    assert jnp.allclose(loss_bf16, ref, rtol=5e-2, atol=5e-2), (loss_bf16, ref)

    # Test 3: unweighted path (weight=None)
    loss_unw = cross_entropy_loss_2d(inputs, targets)
    jax.block_until_ready(loss_unw)
    ref_unw = _reference(inputs, targets, jnp.ones((C,), jnp.float32))
    assert jnp.allclose(loss_unw, ref_unw, rtol=1e-5, atol=1e-5), (loss_unw, ref_unw)

    # Test 4: non-128-divisible spatial extent -> partial (un-padded) logits
    # boundary block + label-only padding
    H2, W2 = 10, 12
    inputs2 = jax.random.normal(keys[2], (1, C, H2, W2), jnp.float32)
    targets2 = jax.random.randint(keys[3], (1, H2, W2), 0, C).astype(jnp.int32)
    targets2 = targets2.at[0, 0, :3].set(IGNORE_LABEL)
    loss2 = cross_entropy_loss_2d(inputs2, targets2, weight)
    jax.block_until_ready(loss2)
    ref2 = _reference(inputs2, targets2, weight)
    assert jnp.allclose(loss2, ref2, rtol=1e-5, atol=1e-5), (loss2, ref2)

    # Test 5: small tile cap -> exercises the in-kernel sub-tile loop,
    # multi-tile accumulation and the N == 1 megacore split axis
    H3, W3 = 64, 64
    inputs3 = jax.random.normal(keys[4], (1, C, H3, W3), jnp.float32)
    targets3 = jax.random.randint(keys[5], (1, H3, W3), 0, C).astype(jnp.int32)
    loss3 = cross_entropy_loss_2d(inputs3, targets3, weight, tp_cap=1024)
    jax.block_until_ready(loss3)
    ref3 = _reference(inputs3, targets3, weight)
    assert jnp.allclose(loss3, ref3, rtol=1e-5, atol=1e-5), (loss3, ref3)

    print("KERNEL_OK")
</pallas_src>

<mosaic_0001>
module attributes {stable_mosaic.version = 11 : i64} {
  func.func @kernel(%arg0: i32, %arg1: i32, %arg2: i32, %arg3: memref<1x4x256xf32, #tpu.memory_space<vmem>>, %arg4: memref<1x1x256xi8, #tpu.memory_space<vmem>>, %arg5: memref<4x1xf32, #tpu.memory_space<vmem>>, %arg6: memref<1x1x1x256xf32, #tpu.memory_space<vmem>>, %arg7: memref<1x1x1x256xf32, #tpu.memory_space<vmem>>) attributes {dimension_semantics = [#tpu.dimension_semantics<parallel>, #tpu.dimension_semantics<parallel>, #tpu.dimension_semantics<arbitrary>], iteration_bounds = array<i64: 2, 1, 1>, scalar_prefetch = 0 : i64, scratch_operands = 0 : i64, tpu.core_type = #tpu.core_type<tc>, window_params = [{transform_indices = @transform_0, window_bounds = array<i64: 1, 4, 256>}, {transform_indices = @transform_1, window_bounds = array<i64: 1, 1, 256>}, {pipeline_mode = #tpu.pipeline_mode<synchronous>, transform_indices = @transform_2, window_bounds = array<i64: 4, 1>}, {transform_indices = @transform_3, window_bounds = array<i64: 1, 1, 1, 256>}, {transform_indices = @transform_4, window_bounds = array<i64: 1, 1, 1, 256>}]} {
    %c0_i32 = arith.constant 0 : i32
    %0 = arith.cmpi eq, %arg2, %c0_i32 : i32
    %1 = arith.extui %0 : i1 to i32
    %c0_i32_0 = arith.constant 0 : i32
    %2 = arith.cmpi ne, %1, %c0_i32_0 : i32
    scf.if %2 {
      %cst_32 = arith.constant 0.000000e+00 : f32
      %51 = vector.broadcast %cst_32 : f32 to vector<1x256xf32>
      %c0_33 = arith.constant 0 : index
      %c0_34 = arith.constant 0 : index
      %c0_35 = arith.constant 0 : index
      %c0_36 = arith.constant 0 : index
      %52 = vector.load %arg6[%c0_33, %c0_34, %c0_35, %c0_36] : memref<1x1x1x256xf32, #tpu.memory_space<vmem>>, vector<1x1x1x256xf32>
      %53 = vector.shape_cast %52 : vector<1x1x1x256xf32> to vector<1x256xf32>
      %54 = vector.shape_cast %51 : vector<1x256xf32> to vector<1x1x1x256xf32>
      tpu.vector_store %arg6[%c0_33, %c0_34, %c0_35, %c0_36], %54 {strides = array<i32>} : memref<1x1x1x256xf32, #tpu.memory_space<vmem>>, vector<1x1x1x256xf32>,
      %cst_37 = arith.constant 0.000000e+00 : f32
      %55 = vector.broadcast %cst_37 : f32 to vector<1x256xf32>
      %c0_38 = arith.constant 0 : index
      %c0_39 = arith.constant 0 : index
      %c0_40 = arith.constant 0 : index
      %c0_41 = arith.constant 0 : index
      %56 = vector.load %arg7[%c0_38, %c0_39, %c0_40, %c0_41] : memref<1x1x1x256xf32, #tpu.memory_space<vmem>>, vector<1x1x1x256xf32>
      %57 = vector.shape_cast %56 : vector<1x1x1x256xf32> to vector<1x256xf32>
      %58 = vector.shape_cast %55 : vector<1x256xf32> to vector<1x1x1x256xf32>
      tpu.vector_store %arg7[%c0_38, %c0_39, %c0_40, %c0_41], %58 {strides = array<i32>} : memref<1x1x1x256xf32, #tpu.memory_space<vmem>>, vector<1x1x1x256xf32>,
    } else {
    }
    %c0 = arith.constant 0 : index
    %c0_1 = arith.constant 0 : index
    %3 = vector.load %arg5[%c0, %c0_1] : memref<4x1xf32, #tpu.memory_space<vmem>>, vector<4x1xf32>
    %4 = vector.shape_cast %3 : vector<4x1xf32> to vector<4x1xf32>
    %5 = vector.broadcast %4 : vector<4x1xf32> to vector<4x256xf32>
    %6 = tpu.iota {dimensions = array<i32: 0>} : vector<4x256xi32>
    %c0_2 = arith.constant 0 : index
    %c0_3 = arith.constant 0 : index
    %c0_4 = arith.constant 0 : index
    %7 = vector.load %arg3[%c0_2, %c0_3, %c0_4] : memref<1x4x256xf32, #tpu.memory_space<vmem>>, vector<1x4x256xf32>
    %8 = vector.shape_cast %7 : vector<1x4x256xf32> to vector<4x256xf32>
    %c0_5 = arith.constant 0 : index
    %c0_6 = arith.constant 0 : index
    %c0_7 = arith.constant 0 : index
    %9 = vector.load %arg4[%c0_5, %c0_6, %c0_7] : memref<1x1x256xi8, #tpu.memory_space<vmem>>, vector<1x1x256xi8>
    %10 = vector.shape_cast %9 : vector<1x1x256xi8> to vector<1x256xi8>
    %11 = arith.extsi %10 : vector<1x256xi8> to vector<1x256xi32>
    %cst = arith.constant dense<0xFF800000> : vector<256xf32>
    %12 = vector.multi_reduction <maximumf>, %8, %cst [0] : vector<4x256xf32> to vector<256xf32>
    %13 = vector.shape_cast %12 : vector<256xf32> to vector<1x256xf32>
    %14 = vector.broadcast %13 : vector<1x256xf32> to vector<4x256xf32>
    %15 = arith.subf %8, %14 : vector<4x256xf32>
    %16 = math.exp %15 : vector<4x256xf32>
    %cst_8 = arith.constant dense<0.000000e+00> : vector<256xf32>
    %17 = vector.multi_reduction <add>, %16, %cst_8 [0] : vector<4x256xf32> to vector<256xf32>
    %18 = vector.shape_cast %17 : vector<256xf32> to vector<1x256xf32>
    %19 = math.log %18 : vector<1x256xf32>
    %20 = arith.addf %19, %13 : vector<1x256xf32>
    %21 = vector.broadcast %11 : vector<1x256xi32> to vector<4x256xi32>
    %22 = arith.cmpi eq, %6, %21 : vector<4x256xi32>
    %cst_9 = arith.constant 0.000000e+00 : f32
    %23 = vector.broadcast %cst_9 : f32 to vector<4x256xf32>
    %24 = arith.select %22, %8, %23 : vector<4x256xi1>, vector<4x256xf32>
    %cst_10 = arith.constant dense<0.000000e+00> : vector<256xf32>
    %25 = vector.multi_reduction <add>, %24, %cst_10 [0] : vector<4x256xf32> to vector<256xf32>
    %26 = vector.shape_cast %25 : vector<256xf32> to vector<1x256xf32>
    %cst_11 = arith.constant 0.000000e+00 : f32
    %27 = vector.broadcast %cst_11 : f32 to vector<4x256xf32>
    %28 = arith.select %22, %5, %27 : vector<4x256xi1>, vector<4x256xf32>
    %cst_12 = arith.constant dense<0.000000e+00> : vector<256xf32>
    %29 = vector.multi_reduction <add>, %28, %cst_12 [0] : vector<4x256xf32> to vector<256xf32>
    %30 = vector.shape_cast %29 : vector<256xf32> to vector<1x256xf32>
    %c0_i32_13 = arith.constant 0 : i32
    %31 = vector.broadcast %c0_i32_13 : i32 to vector<1x256xi32>
    %32 = arith.cmpi sge, %11, %31 : vector<1x256xi32>
    %33 = arith.subf %20, %26 : vector<1x256xf32>
    %c0_14 = arith.constant 0 : index
    %c0_15 = arith.constant 0 : index
    %c0_16 = arith.constant 0 : index
    %c0_17 = arith.constant 0 : index
    %34 = vector.load %arg6[%c0_14, %c0_15, %c0_16, %c0_17] : memref<1x1x1x256xf32, #tpu.memory_space<vmem>>, vector<1x1x1x256xf32>
    %35 = vector.shape_cast %34 : vector<1x1x1x256xf32> to vector<1x256xf32>
    %36 = arith.mulf %33, %30 : vector<1x256xf32>
    %cst_18 = arith.constant 0.000000e+00 : f32
    %37 = vector.broadcast %cst_18 : f32 to vector<1x256xf32>
    %38 = arith.select %32, %36, %37 : vector<1x256xi1>, vector<1x256xf32>
    %39 = arith.addf %35, %38 : vector<1x256xf32>
    %c0_19 = arith.constant 0 : index
    %c0_20 = arith.constant 0 : index
    %c0_21 = arith.constant 0 : index
    %c0_22 = arith.constant 0 : index
    %40 = vector.load %arg6[%c0_19, %c0_20, %c0_21, %c0_22] : memref<1x1x1x256xf32, #tpu.memory_space<vmem>>, vector<1x1x1x256xf32>
    %41 = vector.shape_cast %40 : vector<1x1x1x256xf32> to vector<1x256xf32>
    %42 = vector.shape_cast %39 : vector<1x256xf32> to vector<1x1x1x256xf32>
    tpu.vector_store %arg6[%c0_19, %c0_20, %c0_21, %c0_22], %42 {strides = array<i32>} : memref<1x1x1x256xf32, #tpu.memory_space<vmem>>, vector<1x1x1x256xf32>,
    %c0_23 = arith.constant 0 : index
    %c0_24 = arith.constant 0 : index
    %c0_25 = arith.constant 0 : index
    %c0_26 = arith.constant 0 : index
    %43 = vector.load %arg7[%c0_23, %c0_24, %c0_25, %c0_26] : memref<1x1x1x256xf32, #tpu.memory_space<vmem>>, vector<1x1x1x256xf32>
    %44 = vector.shape_cast %43 : vector<1x1x1x256xf32> to vector<1x256xf32>
    %cst_27 = arith.constant 0.000000e+00 : f32
    %45 = vector.broadcast %cst_27 : f32 to vector<1x256xf32>
    %46 = arith.select %32, %30, %45 : vector<1x256xi1>, vector<1x256xf32>
    %47 = arith.addf %44, %46 : vector<1x256xf32>
    %c0_28 = arith.constant 0 : index
    %c0_29 = arith.constant 0 : index
    %c0_30 = arith.constant 0 : index
    %c0_31 = arith.constant 0 : index
    %48 = vector.load %arg7[%c0_28, %c0_29, %c0_30, %c0_31] : memref<1x1x1x256xf32, #tpu.memory_space<vmem>>, vector<1x1x1x256xf32>
    %49 = vector.shape_cast %48 : vector<1x1x1x256xf32> to vector<1x256xf32>
    %50 = vector.shape_cast %47 : vector<1x256xf32> to vector<1x1x1x256xf32>
    tpu.vector_store %arg7[%c0_28, %c0_29, %c0_30, %c0_31], %50 {strides = array<i32>} : memref<1x1x1x256xf32, #tpu.memory_space<vmem>>, vector<1x1x1x256xf32>,
    return
  }
  func.func @transform_0(%arg0: i32, %arg1: i32, %arg2: i32) -> (i32, i32, i32) {
    %c1_i32 = arith.constant 1 : i32
    %0 = arith.muli %arg1, %c1_i32 : i32
    %1 = arith.addi %0, %arg2 : i32
    %c0_i32 = arith.constant 0 : i32
    %c0_i32_0 = arith.constant 0 : i32
    return %arg0, %c0_i32, %1 : i32, i32, i32
  }
  func.func @transform_1(%arg0: i32, %arg1: i32, %arg2: i32) -> (i32, i32, i32) {
    %c1_i32 = arith.constant 1 : i32
    %0 = arith.muli %arg1, %c1_i32 : i32
    %1 = arith.addi %0, %arg2 : i32
    %c0_i32 = arith.constant 0 : i32
    %c0_i32_0 = arith.constant 0 : i32
    return %arg0, %c0_i32, %1 : i32, i32, i32
  }
  func.func @transform_2(%arg0: i32, %arg1: i32, %arg2: i32) -> (i32, i32) {
    %c0_i32 = arith.constant 0 : i32
    %c0_i32_0 = arith.constant 0 : i32
    %c0_i32_1 = arith.constant 0 : i32
    return %c0_i32, %c0_i32_0 : i32, i32
  }
  func.func @transform_3(%arg0: i32, %arg1: i32, %arg2: i32) -> (i32, i32, i32, i32) {
    %c0_i32 = arith.constant 0 : i32
    %c0_i32_0 = arith.constant 0 : i32
    %c0_i32_1 = arith.constant 0 : i32
    return %arg0, %arg1, %c0_i32, %c0_i32_0 : i32, i32, i32, i32
  }
  func.func @transform_4(%arg0: i32, %arg1: i32, %arg2: i32) -> (i32, i32, i32, i32) {
    %c0_i32 = arith.constant 0 : i32
    %c0_i32_0 = arith.constant 0 : i32
    %c0_i32_1 = arith.constant 0 : i32
    return %arg0, %arg1, %c0_i32, %c0_i32_0 : i32, i32, i32, i32
  }
}

</mosaic_0001>

<bundles_post_ra>
// kernel: tpu_custom_call.1
= control target key start
LH: loop header
LB: loop body
LE: loop exit
PB: predicated region body
PF: predicated region fallthrough
CT: control target
= control target key end

     0   :  { %10 = vsyncpa [#allocation3], 0  ;;  %s1102_s0 = inlined_call_operand.hbm [shape: f32[2,4,256], index: 0, kind: input, shape index: {}]   ;;  %s1103_s1 = inlined_call_operand.vmem [shape: s8[2,1,256], index: 1, kind: input, shape index: {}]   ;;  %s1104_s2 = inlined_call_operand.vmem [shape: f32[4,1], index: 2, kind: input, shape index: {}]   ;;  %s1105_s3 = inlined_call_operand.hbm [shape: f32[2,1,1,256], index: 3, kind: output, shape index: {0}]   ;;  %s1106_s4 = inlined_call_operand.hbm [shape: f32[2,1,1,256], index: 4, kind: output, shape index: {1}]  }
   0x1   :  { %12 = vsyncpa [#allocation3 + $0x1], 0 }
   0x2   :  { %13 = vsyncpa [#allocation4], 0 }
   0x3   :  { %15 = vsyncpa [#allocation4 + $0x1], 0 }
   0x4   :  { %16 = vsyncpa [#allocation7], 0 }
   0x5   :  { %18 = vsyncpa [#allocation7 + $0x1], 0  ;;  %s898_s15 = smov 0   ;;  %s900_s16 = smov 0  }
   0x6   :  { %s902_s17 = smov 0   ;;  %s904_s18 = smov 0  }
   0x7   :  { %s906_s19 = smov 0   ;;  %s908_s20 = smov 0  }
   0x8 LB: > { %s630_s21 = sadd.s32 4294967295, %s869_s20   ;;  %s631_s22 = sadd.s32 4294967294, %s869_s20   ;;  %s869_s20 = sphi %s908_s20, %s24_s20   ;;  %s865_s19 = sphi %s906_s19, %s1117_s19   ;;  %s861_s18 = sphi %s904_s18, %s1116_s18   ;;  %s857_s17 = sphi %s902_s17, %s1115_s17   ;;  %s853_s16 = sphi %s900_s16, %s1114_s16   ;;  %s849_s15 = sphi %s898_s15, %s1113_s15  }
   0x9   : > { %s43_s23 = sadd.s32 1, %s865_s19  ;;  %s54_s24 = sadd.s32 1, %s857_s17 }
   0xa   : > { %p45_p0 = scmp.ge.s32.totalorder %s43_s23, 2  ;;  %p61_p1 = scmp.ne.s32.totalorder %s857_s17, %s853_s16 }
   0xb   : > { %p62_p2 = scmp.eq.s32.totalorder %s869_s20, 0  ;;  %p67_p3 = scmp.ne.s32.totalorder %s853_s16, %s849_s15 }
   0xc   : > { %s1119_s23 = smov (%p45_p0, %s43_s23), 0  ;;  %p68_p5 = scmp.eq.s32.totalorder %s630_s21, 0 }
   0xd   : > { %p939_p4 = por %p62_p2, %p61_p1  ;;  %s49_s26 = ssub.s32 %s865_s19, %s1119_s23 }
   0xe   : > { %p144_p6 = scmp.eq.s32.totalorder %s630_s21, 1  ;;  %p52_p7 = scmp.eq.s32.totalorder %s49_s26, 0 }
   0xf   : > { %p945_p8 = por %p68_p5, %p67_p3  ;;  %p150_p10 = scmp.eq.s32.totalorder %s631_s22, 1 }
  0x10   : > { %p949_p9 = por %p144_p6, %p61_p1  ;;  %p633_p12 = scmp.ge.s32.totalorder %s869_s20, 2 }
  0x11   : > { %s954_s29 = scalar_select %p52_p7, %s857_s17, %s54_s24  }
  0x12   : > { %p956_p11 = por %p150_p10, %p67_p3  ;;  %p666_p13 = scmp.lt.s32.totalorder %s869_s20, 2 }
  0x13   : > { %s201_s5 = sand.u32 1, %s857_s17   ;;  %s648_s7 = sshll.u32 %s865_s19, 3 }
  0x14   : > { %s634_s6 = sshll.u32 %s201_s5, 3  ;;  %s213_s10 = scalar_lea.hbm %s1102_s0, %s648_s7 }
  0x15   : > { %s205_s11 = scalar_lea.vmem [#allocation2], %s634_s6  ;;  %s215_s13 = sshll.u32 %s213_s10, 4  ;;  %s216_s13 = int_to_ptr.hbm [resolvable:$true] %s215_s13 }
  0x16   : > { %s217_s12 = sshll.u32 %s205_s11, 4  ;;  %p656_p0 = pnand %p666_p13, %p939_p4  ;;  %s218_s12 = int_to_ptr.vmem [resolvable:$true] %s217_s12 }
  0x17   : > { %p637_p1 = scmp.ge.s32.totalorder %s869_s20, 1  ;;  %p236_p2 = scmp.lt.s32.totalorder %s869_s20, 3 }
  0x18   : > { %s202_s14 = scalar_lea.sflag [#allocation3], %s201_s5 }
  0x19   : > { %658 = dma.hbm_to_vmem [thread:$0]  (!%p656_p0), %s216_s13, 128, %s218_s12, %s202_s14  }
  0x1a   : > { %p237_p3 = pnand %p637_p1, %p236_p2 }
  0x1b   : > { %s972_s21 = sand.u32 (!%p237_p3), 1, %s853_s16  }
  0x1c   : > { %240 = sbr.rel (%p237_p3) target bundleno = 189 (0xbd), region = 32  ;;  %s638_s22 = sshll.u32 (!%p237_p3), %s972_s21, 3 }
  0x1d   : > { %s243_s24 = scalar_lea.sflag (!%p237_p3), [#allocation3], %s972_s21  ;;  %s246_s26 = scalar_lea.vmem (!%p237_p3), [#allocation2], %s638_s22 }
  0x21   : > { %836 = dma.done.wait (%p945_p8), %s243_s24, 128  }
  0x22   : > { %838 = vsyncadd (%p945_p8), %s243_s24, 4294967168  ;;  %v871_v0 = vmov 0   ;;  %v309_v1 = vld [vmem:[%s1104_s2] sm:$0xf]  ;;  %v317_v2 = vld [vmem:[%s246_s26] sm:$0xff]  ;;  %vm326_vm0 = vcmask 1043456   ;;  %v303_v30 = vlaneseq }
  0x23   : > { %718 = vset.pattern.permute.xlu0 %v871_v0  ;;  %321 = vst [vmem:[#allocation1] ss:$2 sm:$0xff] %v317_v2  ;;  %p290_p4 = scmp.lt.s32.totalorder %s861_s18, 1  ;;  %s639_s10 = sshll.u32 %s972_s21, 1  ;;  %v872_v47 = vmov 0.0   ;;  %vm432_vm5 = vcmask 1040384  }
  0x24   : > { %312 = vperm.xlu0 %718, %v309_v1   ;;  %v316_v35 = vshrl.u32 %v303_v30, 7  ;;  %vm1004_vm2 = vcmp.lt.s32.totalorder %v303_v30, 256  ;;  %s1009_s11 = scalar_lea.vmem [#allocation5], %s639_s10  ;;  %s1015_s12 = scalar_lea.vmem [#allocation6], %s639_s10 }
  0x25   : > { %s291_s27 = scalar_select %p290_p4, %s861_s18, 1  ;;  %307 = vst.msk [vmem:[%s1009_s11] sm:$0x3] %vm1004_vm2, %v872_v47 }
  0x26   : > { %308 = vst.msk [vmem:[%s1015_s12] sm:$0x3] %vm1004_vm2, %v872_v47  ;;  %s644_s13 = sshll.u32 %s861_s18, 1  ;;  %s490_s5 = sshll.u32 %s1015_s12, 4  ;;  %s491_s5 = int_to_ptr.vmem [resolvable:$true] %s490_s5 }
  0x27   : > { %s641_s6 = sshll.u32 %s291_s27, 1  ;;  %s488_s24 = scalar_lea.hbm %s1106_s4, %s644_s13 }
  0x28   : > { %s296_s9 = scalar_lea.vmem %s1103_s1, %s641_s6  ;;  %s472_s18 = scalar_lea.hbm %s1105_s3, %s644_s13 }
  0x29   : > { %v318_v26 = vld [vmem:[%s296_s9] sm:$0x3]  ;;  %s492_s27 = sshll.u32 %s488_s24, 4  ;;  %s474_s6 = sshll.u32 %s1009_s11, 4  ;;  %s493_s27 = int_to_ptr.hbm [resolvable:$true] %s492_s27  ;;  %s1044_s6 = int_to_ptr.vmem [resolvable:$true] %s474_s6 }
  0x2a   : > { %v322_v3 = vld.sshfl [vmem:[#allocation1] sm:$0xff pattern:$0x75316420]  ;;  %v323_v4 = vld.sshfl [vmem:[#allocation1 + $0x8] sm:$0xff pattern:$0x75316420]  ;;  %v997_v27 = vunpack.c.0.s8 %v318_v26 }
  0x2b   : > { %v327_v5 = vsel %vm326_vm0, %v322_v3, -inf  ;;  %v334_v6 = vsel %vm326_vm0, %v323_v4, -inf  ;;  %s476_s7 = sshll.u32 %s472_s18, 4  ;;  %s460_s8 = scalar_lea.sflag [#allocation7], %s972_s21  ;;  %s1046_s7 = int_to_ptr.hbm [resolvable:$true] %s476_s7 }
  0x2c   : > { %v328_v7 = vrot.slane %v327_v5, 4  ;;  %v335_v8 = vrot.slane %v334_v6, 4  ;;  %v376_v32 = vperm.slane %v997_v27, 4  ;;  %v375_v34 = vperm.slane %v997_v27, 0  ;;  %s769_s9 = sshra.s32 %s493_s27, 4  ;;  %s775_s22 = scalar_lea.hbm %s1106_s4, 4  ;;  %s770_s9 = int_to_ptr.hbm [resolvable:$true] %s769_s9 }
  0x2d   : > { %vm418_vm4 = vcmp.ge.s32.totalorder %v997_v27, 0  ;;  %s771_s10 = scalar_lea.hbm %s770_s9, 2  ;;  %p776_p8 = scmp.lt.s32.totalorder %s770_s9, %s1106_s4 }
  0x2e   : > { %v329_v9 = vmax.f32 %v327_v5, %v328_v7  ;;  %v336_v10 = vmax.f32 %v334_v6, %v335_v8  ;;  %v378_v37 = vperm.slane %v376_v32, 0  ;;  %v377_v39 = vperm.slane %v375_v34, 0  ;;  %p772_p5 = scmp.ne.s32.totalorder %s770_s9, %s771_s10  ;;  %p777_p10 = scmp.lt.s32.totalorder %s775_s22, %s771_s10 }
  0x30   : > { %v330_v11 = vrot.slane %v329_v9, 2  ;;  %v337_v12 = vrot.slane %v336_v10, 2  ;;  %vm380_vm1 = vcmp.eq.s32.totalorder %v316_v35, %v378_v37  ;;  %vm379_vm3 = vcmp.eq.s32.totalorder %v316_v35, %v377_v39  ;;  %v441_v37 = vld [vmem:[%s1015_s12] sm:$0x3]  ;;  %p773_p6 = pnand %p772_p5, %p949_p9  ;;  %p778_p13 = por %p777_p10, %p776_p8 }
  0x32   : > { %v331_v13 = vmax.f32 %v329_v9, %v330_v11  ;;  %v338_v14 = vmax.f32 %v336_v10, %v337_v12  ;;  %p774_p7 = pneg %p773_p6 }
  0x34   : > { %v332_v15 = vrot.slane %v331_v13, 1  ;;  %v339_v16 = vrot.slane %v338_v14, 1  ;;  %p779_p0 = pnand %p778_p13, %p774_p7 }
  0x36   : > { %v985_v17 = vmax.f32 %v331_v13, %v332_v15  ;;  %v987_v18 = vmax.f32 %v338_v14, %v339_v16 }
  0x38   : > { %v343_v19 = vrot.slane %v987_v18, 4 }
  0x3a   : > { %v344_v20 = vsel %vm326_vm0, %v985_v17, %v343_v19 }
  0x3b   : > { %v346_v21 = vsub.f32 %v317_v2, %v344_v20 }
  0x3d   : > { %v347_v22 = vmul.f32 1.442695, %v346_v21 }
  0x3f   : > { %719 = vpow2.f32 %v347_v22 }
  0x45   : > { %v720_v23 = vpop.eup %719 }
  0x46   : > { %350 = vst [vmem:[#allocation1] ss:$2 sm:$0xff] %v720_v23 }
  0x4d   : > { %v351_v24 = vld.sshfl [vmem:[#allocation1] sm:$0xff pattern:$0x75316420]  ;;  %v352_v25 = vld.sshfl [vmem:[#allocation1 + $0x8] sm:$0xff pattern:$0x75316420] }
  0x4e   : > { %381 = vst [vmem:[#allocation1] ss:$2 sm:$0xff] %v317_v2  ;;  %v362_v28 = vsel %vm326_vm0, %v352_v25, 0.0  ;;  %v355_v29 = vsel %vm326_vm0, %v351_v24, 0.0 }
  0x4f   : > { %v363_v31 = vrot.slane %v362_v28, 4  ;;  %v356_v33 = vrot.slane %v355_v29, 4 }
  0x51   : > { %v364_v36 = vadd.f32 %v363_v31, %v362_v28  ;;  %v357_v38 = vadd.f32 %v356_v33, %v355_v29 }
  0x53   : > { %v365_v40 = vrot.slane %v364_v36, 2  ;;  %v358_v43 = vrot.slane %v357_v38, 2 }
  0x55   : > { %v383_v41 = vld.sshfl [vmem:[#allocation1 + $0x8] sm:$0xff pattern:$0x75316420]  ;;  %v382_v44 = vld.sshfl [vmem:[#allocation1] sm:$0xff pattern:$0x75316420]  ;;  %v366_v46 = vadd.f32 %v365_v40, %v364_v36  ;;  %v359_v49 = vadd.f32 %v358_v43, %v357_v38 }
  0x56   : > { %v387_v45 = vsel %vm380_vm1, %v383_v41, 0.0  ;;  %v386_v48 = vsel %vm379_vm3, %v382_v44, 0.0  ;;  %v421_v41 = vld [vmem:[%s1009_s11] sm:$0x3] }
  0x57   : > { %v395_v50 = vsel %vm326_vm0, %v387_v45, 0.0  ;;  %v367_v51 = vrot.slane %v366_v46, 1  ;;  %v388_v52 = vsel %vm326_vm0, %v386_v48, 0.0  ;;  %v360_v54 = vrot.slane %v359_v49, 1 }
  0x58   : > { %v396_v53 = vrot.slane %v395_v50, 4  ;;  %v389_v55 = vrot.slane %v388_v52, 4 }
  0x59   : > { %v368_v56 = vadd.f32 %v367_v51, %v366_v46  ;;  %v361_v58 = vadd.f32 %v360_v54, %v359_v49 }
  0x5a   : > { %v397_v57 = vadd.f32 %v396_v53, %v395_v50  ;;  %v390_v59 = vadd.f32 %v389_v55, %v388_v52 }
  0x5b   : > { %721 = vlog2.f32 %v368_v56 }
  0x5c   : > { %v398_v60 = vrot.slane %v397_v57, 2  ;;  %723 = vlog2.f32 %v361_v58  ;;  %v391_v61 = vrot.slane %v390_v59, 2 }
  0x5e   : > { %v399_v62 = vadd.f32 %v398_v60, %v397_v57  ;;  %v392_v1 = vadd.f32 %v391_v61, %v390_v59 }
  0x60   : > { %v400_v8 = vrot.slane %v399_v62, 1  ;;  %v393_v12 = vrot.slane %v392_v1, 1 }
  0x61   : > { %v722_v63 = vpop.eup %721 }
  0x62   : > { %v724_v4 = vpop.eup %723  ;;  %v372_v7 = vmul.f32 0.6931472, %v722_v63  ;;  %v401_v16 = vadd.f32 %v400_v8, %v399_v62  ;;  %v394_v22 = vadd.f32 %v393_v12, %v392_v1 }
  0x63   : > { %v370_v11 = vmul.f32 0.6931472, %v724_v4 }
  0x64   : > { %v374_v15 = vadd.f32 %v372_v7, %v987_v18 }
  0x65   : > { %v373_v21 = vadd.f32 %v370_v11, %v985_v17 }
  0x66   : > { %v420_v25 = vsub.f32 %v374_v15, %v401_v16 }
  0x67   : > { %v419_v29 = vsub.f32 %v373_v21, %v394_v22 }
  0x96   : > { %v313_v0 = vpop.permute.xlu0 %312 }
  0x97   : > { %v402_v2 = vsel %vm379_vm3, %v313_v0, 0.0  ;;  %v403_v3 = vsel %vm380_vm1, %v313_v0, 0.0 }
  0x98   : > { %v404_v5 = vsel %vm326_vm0, %v402_v2, 0.0  ;;  %v411_v6 = vsel %vm326_vm0, %v403_v3, 0.0 }
  0x99   : > { %v405_v9 = vrot.slane %v404_v5, 4  ;;  %v412_v10 = vrot.slane %v411_v6, 4 }
  0x9b   : > { %v406_v13 = vadd.f32 %v405_v9, %v404_v5  ;;  %v413_v14 = vadd.f32 %v412_v10, %v411_v6 }
  0x9d   : > { %v407_v19 = vrot.slane %v406_v13, 2  ;;  %v414_v20 = vrot.slane %v413_v14, 2 }
  0x9f   : > { %v408_v23 = vadd.f32 %v407_v19, %v406_v13  ;;  %v415_v24 = vadd.f32 %v414_v20, %v413_v14 }
  0xa1   : > { %v409_v26 = vrot.slane %v408_v23, 1  ;;  %v416_v28 = vrot.slane %v415_v24, 1 }
  0xa3   : > { %v410_v30 = vadd.f32 %v409_v26, %v408_v23  ;;  %v417_v31 = vadd.f32 %v416_v28, %v415_v24 }
  0xa5   : > { %v423_v18 = vmul.f32 %v420_v25, %v417_v31  ;;  %v444_v32 = vrot.slane %v417_v31, 4  ;;  %v422_v17 = vmul.f32 %v419_v29, %v410_v30 }
  0xa7   : > { %v426_v33 = vrot.slane %v423_v18, 4  ;;  %v445_v34 = vsel %vm326_vm0, %v410_v30, %v444_v32 }
  0xa8   : > { %v447_v35 = vsel %vm418_vm4, %v445_v34, 0.0 }
  0xa9   : > { %v427_v27 = vsel %vm326_vm0, %v422_v17, %v426_v33  ;;  %v449_v36 = vrot.slane %v447_v35, 3 }
  0xaa   : > { %v429_v38 = vsel %vm418_vm4, %v427_v27, 0.0 }
  0xab   : > { %v431_v39 = vrot.slane %v429_v38, 3  ;;  %v450_v40 = vsel %vm432_vm5, %v447_v35, %v449_v36 }
  0xac   : > { %v452_v43 = vadd.f32 %v450_v40, %v441_v37 }
  0xad   : > { %v433_v44 = vsel %vm432_vm5, %v429_v38, %v431_v39 }
  0xae   : > { %v435_v45 = vadd.f32 %v433_v44, %v421_v41  ;;  %453 = vst.msk [vmem:[%s1015_s12] sm:$0x3] %vm1004_vm2, %v452_v43 }
  0xaf   : > { %782 = shalt.err (!%p779_p0)
}
  0xb0   : > { %652 = dma.vmem_to_hbm [thread:$0]  (%p949_p9), %s491_s5, 32, %s493_s27, %s460_s8   ;;  %440 = vst.msk [vmem:[%s1009_s11] sm:$0x3] %vm1004_vm2, %v435_v45 }
  0xb1   : > { %s455_s12 = scalar_lea.sflag [#allocation4], %s972_s21  ;;  %s797_s25 = sshra.s32 %s1046_s7, 4  ;;  %s798_s25 = int_to_ptr.hbm [resolvable:$true] %s797_s25 }
  0xb2   : > { %s799_s18 = scalar_lea.hbm %s798_s25, 2  ;;  %s803_s13 = scalar_lea.hbm %s1105_s3, 4 }
  0xb3   : > { %p800_p1 = scmp.ne.s32.totalorder %s798_s25, %s799_s18  ;;  %p804_p4 = scmp.lt.s32.totalorder %s798_s25, %s1105_s3 }
  0xb4   : > { %p805_p5 = scmp.lt.s32.totalorder %s803_s13, %s799_s18 }
  0xb5   : > { %p801_p2 = pnand %p800_p1, %p949_p9 }
  0xb6   : > { %p806_p6 = por %p805_p5, %p804_p4 }
  0xb7   : > { %p802_p3 = pneg %p801_p2 }
  0xb9   : > { %p807_p7 = pnand %p806_p6, %p802_p3 }
  0xbb   : > { %810 = shalt.err (!%p807_p7)
}
  0xbc   : > { %651 = dma.vmem_to_hbm [thread:$0]  (%p949_p9), %s1044_s6, 32, %s1046_s7, %s455_s12  }
  0xbd PF: > { %s504_s21 = sand.u32 1, %s849_s15   ;;  %p660_p8 = pnand %p633_p12, %p956_p11 }
  0xbe   : > { %s505_s11 = scalar_lea.sflag [#allocation4], %s504_s21 }
  0xbf   : > { %p661_p10 = pneg %p660_p8 }
  0xc1   : > { %840 = dma.done.wait (%p661_p10), %s505_s11, 32  }
  0xc2   : > { %842 = vsyncadd (%p661_p10), %s505_s11, 4294967264  ;;  %s515_s5 = scalar_lea.sflag [#allocation7], %s504_s21 }
  0xc3   : > { %844 = dma.done.wait (%p661_p10), %s515_s5, 32  }
  0xc4   : > { %846 = vsyncadd (%p661_p10), %s515_s5, 4294967264  ;;  %s24_s20 = sadd.s32 1, %s869_s20   ;;  %s1113_s15 = smov %s853_s16 }
  0xc5   : > { %p21_p13 = scmp.ge.s32.totalorder %s24_s20, 4   ;;  %s1114_s16 = smov %s857_s17 }
  0xc6   : > { %s1115_s17 = smov %s954_s29  ;;  %s1116_s18 = smov %s865_s19 }
  0xc7   : > { %s1117_s19 = smov %s1119_s23  ;;  %23 = sbr.rel (!%p21_p13) target bundleno = 8 (0x8), region = 101 }
  0xcc   :  { %521 = vsyncpa [#allocation3], 1 }
  0xcd   :  { %523 = vsyncpa [#allocation3 + $0x1], 1 }
  0xce   :  { %524 = vsyncpa [#allocation4], 1 }
  0xcf   :  { %526 = vsyncpa [#allocation4 + $0x1], 1 }
  0xd0   :  { %527 = vsyncpa [#allocation7], 1 }
  0xd1   :  { %529 = vsyncpa [#allocation7 + $0x1], 1 }

</bundles_post_ra>
